<compile_context>
chip_gen: v5e
topology: v5e:2x2
jax: 0.10.0
libtpu: 0.0.40
codegen_flags: <defaults>
</compile_context>

<pallas_src>
import functools
import numpy as np
import jax
import jax.numpy as jnp
from jax.experimental import pallas as pl
from jax.experimental.pallas import tpu as pltpu

# Static architecture config (kept out of the traced parameter pytree).
LAYER_CFG = [(64, 1), (128, 2), (256, 2), (512, 2)]   # (out_ch, stride), 2 blocks each
DECONV_CHS = [(512, 256), (256, 128), (128, 64), (64, 32), (32, 16)]

ENABLE_INT8 = True             # weight-only int8 for the big mats (dequant in-kernel)
_QUANT_MIN_ELEMS = 1 << 19     # only matrices >= 1 MiB (bf16) are quantized
_VMEM_BUDGET = 24 * 1024 * 1024


def _detect_num_tensorcores():
    try:
        kind = jax.devices()[0].device_kind.lower()
    except Exception:
        return 1
    return 2 if "v7" in kind else 1


_NUM_TC = _detect_num_tensorcores()


# ----------------------------------------------------------------------------
# Fused Pallas matmul kernel (single K step, full-K blocks):
#   out = [relu](A @ dequant(B) * scale + shift [+ residual]) [@ W6 + b6]
# ----------------------------------------------------------------------------
def _mm_kernel(*refs, relu, quantized, has_res, has_w6):
    it = iter(refs)
    a_ref = next(it)
    b_ref = next(it)
    t_ref = next(it)
    s_ref = next(it) if quantized else None
    r_ref = next(it) if has_res else None
    w6_ref = next(it) if has_w6 else None
    b6_ref = next(it) if has_w6 else None
    o_ref = next(it)

    b = b_ref[...]
    if quantized:
        b = b.astype(jnp.bfloat16)                 # weight-only dequant (int8 -> bf16)
    acc = jnp.dot(a_ref[...], b, preferred_element_type=jnp.float32)
    if quantized:
        acc = acc * s_ref[...]                     # per-output-channel dequant scale
    acc = acc + t_ref[...]                         # folded-BN shift / bias
    if has_res:
        acc = acc + r_ref[...].astype(jnp.float32)
    if relu:
        acc = jnp.maximum(acc, 0.0)
    if has_w6:                                     # fused 1x1 conv6 head (block-diag)
        acc = jnp.dot(acc.astype(jnp.bfloat16), w6_ref[...],
                      preferred_element_type=jnp.float32) + b6_ref[...]
    o_ref[...] = acc.astype(o_ref.dtype)


def _pick_tiles(M, K, N, b_bytes, out_bytes, quantized, has_res, allow_n_split):
    """Full-size blocks when they fit VMEM; split only if forced or for v7x."""
    def live(bm, bn):
        tot = 2 * bm * K * 2                       # bf16 A, double-buffered
        tot += 2 * K * bn * b_bytes                # B (bf16 or int8)
        if quantized:
            tot += K * bn * 2                      # in-kernel dequantized copy
        tot += 2 * bm * bn * out_bytes             # output
        if has_res:
            tot += 2 * bm * bn * 2                 # bf16 residual
        return tot

    BM, BN = M, N
    while allow_n_split and live(BM, BN) > _VMEM_BUDGET and BN % 256 == 0:
        BN //= 2
    while live(BM, BN) > _VMEM_BUDGET and BM % 256 == 0 and BM > 256:
        BM //= 2
    # v7x megacore: make sure both TensorCores get at least one (i, j) tile.
    if _NUM_TC >= 2 and (M // BM) * (N // BN) < _NUM_TC:
        if BM >= 64 and BM % 32 == 0:
            BM //= 2
        elif allow_n_split and BN % 256 == 0:
            BN //= 2
    return BM, BN


def fused_matmul(A, B, shift, *, scale=None, residual=None, relu=False,
                 w6=None, b6=None, out_dtype=jnp.bfloat16):
    M, K = A.shape
    K2, N = B.shape
    assert K2 == K
    A = A.astype(jnp.bfloat16)                     # no-op for bf16 activations
    quantized = scale is not None
    has_res = residual is not None
    has_w6 = w6 is not None
    n_out = N if not has_w6 else w6.shape[1]

    BM, BN = _pick_tiles(M, K, N, B.dtype.itemsize, jnp.dtype(out_dtype).itemsize,
                         quantized, has_res, allow_n_split=not has_w6)
    if has_w6:
        assert BN == N                             # fused head needs the full row
    grid = (M // BM, N // BN)

    in_specs = [pl.BlockSpec((BM, K), lambda i, j: (i, 0)),
                pl.BlockSpec((K, BN), lambda i, j: (0, j)),
                pl.BlockSpec((1, BN), lambda i, j: (0, j))]
    args = [A, B, shift.astype(jnp.float32).reshape(1, N)]
    if quantized:
        in_specs.append(pl.BlockSpec((1, BN), lambda i, j: (0, j)))
        args.append(scale.astype(jnp.float32).reshape(1, N))
    if has_res:
        in_specs.append(pl.BlockSpec((BM, BN), lambda i, j: (i, j)))
        args.append(residual.astype(jnp.bfloat16))
    if has_w6:
        in_specs.append(pl.BlockSpec((N, n_out), lambda i, j: (0, 0)))
        args.append(w6.astype(jnp.bfloat16))
        in_specs.append(pl.BlockSpec((1, n_out), lambda i, j: (0, 0)))
        args.append(b6.astype(jnp.float32).reshape(1, n_out))

    out_bn = BN if not has_w6 else n_out
    kernel = functools.partial(_mm_kernel, relu=relu, quantized=quantized,
                               has_res=has_res, has_w6=has_w6)
    return pl.pallas_call(
        kernel,
        out_shape=jax.ShapeDtypeStruct((M, n_out), out_dtype),
        grid_spec=pltpu.PrefetchScalarGridSpec(
            num_scalar_prefetch=0,
            grid=grid,
            in_specs=in_specs,
            out_specs=pl.BlockSpec((BM, out_bn), lambda i, j: (i, j)),
        ),
        compiler_params=pltpu.CompilerParams(
            dimension_semantics=("parallel", "parallel"),
            vmem_limit_bytes=48 * 1024 * 1024),
    )(*args)


# ----------------------------------------------------------------------------
# Conv / deconv / pool wrappers on top of the fused matmul (NHWC layout)
# ----------------------------------------------------------------------------
def im2col_nhwc(x, kh, kw, stride, pad):
    # x: (N, H, W, C) -> (N*Ho*Wo, kh*kw*C), columns flattened in (kh, kw, C).
    if pad:
        x = jnp.pad(x, ((0, 0), (pad, pad), (pad, pad), (0, 0)))
    n, hp, wp, c = x.shape
    ho = (hp - kh) // stride + 1
    wo = (wp - kw) // stride + 1
    taps = []
    for i in range(kh):                       # static Python ints -> static slices
        for j in range(kw):
            taps.append(x[:, i:i + stride * ho:stride, j:j + stride * wo:stride, :])
    patches = jnp.stack(taps, axis=3)         # (N, Ho, Wo, kh*kw, C)
    return patches.reshape(n * ho * wo, kh * kw * c), ho, wo


def conv_packed(x, pw, kh, kw, stride, pad, relu, residual=None,
                out_dtype=jnp.bfloat16):
    n = x.shape[0]
    cin = x.shape[-1]
    if kh == 1 and kw == 1 and pad == 0:      # 1x1 conv: no im2col needed
        if stride > 1:
            x = x[:, ::stride, ::stride, :]
        ho, wo = x.shape[1], x.shape[2]
        A = x.reshape(n * ho * wo, cin)
    else:
        A, ho, wo = im2col_nhwc(x, kh, kw, stride, pad)
    res2 = None
    if residual is not None:
        res2 = residual.reshape(n * ho * wo, -1)
    out2 = fused_matmul(A, pw["B"], pw["shift"], scale=pw.get("scale"),
                        residual=res2, relu=relu, out_dtype=out_dtype)
    return out2.reshape(n, ho, wo, out2.shape[-1])


def _deconv_weight_matrix(wt):
    # wt: (Cin, Cout, 4, 4) -> (4*Cin, 4*Cout) combining the four output-parity
    # phases of ConvTranspose2d(k=4, s=2, p=1). Row order matches im2col's
    # (dy, dx, ci); column order is (phase = 2*py + px, co).
    cin, cout = wt.shape[0], wt.shape[1]
    phase_cols = []
    for py in range(2):
        for px in range(2):
            rows = []
            for dy in range(2):
                for dx in range(2):
                    ky = 3 - py - 2 * dy
                    kx = 3 - px - 2 * dx
                    rows.append(wt[:, :, ky, kx])            # (Cin, Cout)
            phase_cols.append(jnp.stack(rows, axis=0).reshape(4 * cin, cout))
    return jnp.concatenate(phase_cols, axis=1)


def conv_transpose_k4s2p1(x, pw, relu, w6=None, b6=None, out_dtype=jnp.bfloat16):
    # ConvTranspose2d(k=4, s=2, p=1, bias=False) via the 4-phase decomposition:
    # one matmul over 2x2 patches of the pad-1 input yields all four parities;
    # the optional (w6, b6) head fuses the final 1x1 conv into the epilogue.
    n, h, w, _ = x.shape
    A, _, _ = im2col_nhwc(x, 2, 2, stride=1, pad=1)     # (n*(h+1)*(w+1), 4*Cin)
    M = A.shape[0]
    Mp = ((M + 31) // 32) * 32                          # sublane/megacore friendly
    if Mp != M:
        A = jnp.pad(A, ((0, Mp - M), (0, 0)))
    R = fused_matmul(A, pw["B"], pw["shift"], scale=pw.get("scale"),
                     relu=relu, w6=w6, b6=b6, out_dtype=out_dtype)
    cout = R.shape[1] // 4
    R = R[:M].reshape(n, h + 1, w + 1, 4, cout)
    p00 = R[:, :h, :w, 0, :]
    p01 = R[:, :h, 1:, 1, :]
    p10 = R[:, 1:, :w, 2, :]
    p11 = R[:, 1:, 1:, 3, :]
    top = jnp.stack([p00, p01], axis=3).reshape(n, h, 2 * w, cout)   # even rows
    bot = jnp.stack([p10, p11], axis=3).reshape(n, h, 2 * w, cout)   # odd rows
    return jnp.stack([top, bot], axis=2).reshape(n, 2 * h, 2 * w, cout)


def maxpool_nhwc(x, k=3, stride=2, pad=1):
    # TODO(synk): pure data movement; kept as lane-dense NHWC max of 9 slices.
    xp = jnp.pad(x, ((0, 0), (pad, pad), (pad, pad), (0, 0)),
                 constant_values=-jnp.inf)
    n, hp, wp, c = xp.shape
    ho = (hp - k) // stride + 1
    wo = (wp - k) // stride + 1
    out = None
    for i in range(k):
        for j in range(k):
            s = xp[:, i:i + stride * ho:stride, j:j + stride * wo:stride, :]
            out = s if out is None else jnp.maximum(out, s)
    return out


# ----------------------------------------------------------------------------
# One-time weight packing (outside the forward jit)
# ----------------------------------------------------------------------------
def _fold_bn(w, bn, eps=1e-5):
    s = bn["gamma"] / jnp.sqrt(bn["var"] + eps)
    t = bn["beta"] - bn["mean"] * s
    return w * s[:, None, None, None], t


def _pack_B(B, shift):
    d = {"shift": shift.astype(jnp.float32)}
    if ENABLE_INT8 and B.size >= _QUANT_MIN_ELEMS:
        amax = jnp.maximum(jnp.max(jnp.abs(B), axis=0), 1e-12)
        scale = (amax / 127.0).astype(jnp.float32)
        d["B"] = jnp.clip(jnp.round(B / scale), -127, 127).astype(jnp.int8)
        d["scale"] = scale
    else:
        d["B"] = B.astype(jnp.bfloat16)
    return d


def _pack_conv(w, shift):
    cout, cin, kh, kw = w.shape
    B = jnp.transpose(w, (2, 3, 1, 0)).reshape(kh * kw * cin, cout)
    return _pack_B(B, shift)


def pack_params(p):
    packed = {}
    w, t = _fold_bn(p["conv1"], p["bn1"])
    packed["conv1"] = _pack_conv(w, t)
    layers = []
    for blocks in p["layers"]:
        pb = []
        for blk in blocks:
            d = {}
            w, t = _fold_bn(blk["conv1"], blk["bn1"])
            d["conv1"] = _pack_conv(w, t)
            w, t = _fold_bn(blk["conv2"], blk["bn2"])
            d["conv2"] = _pack_conv(w, t)
            if "ds_conv" in blk:
                w, t = _fold_bn(blk["ds_conv"], blk["ds_bn"])
                d["ds"] = _pack_conv(w, t)
            pb.append(d)
        layers.append(pb)
    packed["layers"] = layers
    packed["deconv"] = []
    for wt in p["deconv"]:
        cout = wt.shape[1]
        packed["deconv"].append(
            _pack_B(_deconv_weight_matrix(wt), jnp.zeros((4 * cout,), jnp.float32)))
    # conv6 (1x1, 16->9, bias) folded into a block-diagonal head applied to the
    # 4 phase groups of the deconv5 matmul output.
    w6 = p["conv6_w"][:, :, 0, 0].T                              # (16, 9)
    packed["head"] = {
        "w6": jnp.kron(jnp.eye(4, dtype=jnp.float32), w6).astype(jnp.bfloat16),
        "b6": jnp.tile(p["conv6_b"], 4).astype(jnp.float32),     # (36,)
    }
    return packed


# ----------------------------------------------------------------------------
# Parameter construction (deterministic, synthetic)
# ----------------------------------------------------------------------------
def init_conv(key, cout, cin, kh, kw):
    std = 1.0 / np.sqrt(cin * kh * kw)
    return std * jax.random.normal(key, (cout, cin, kh, kw), jnp.float32)


def init_bn(key, c):
    k1, k2, k3, k4 = jax.random.split(key, 4)
    return dict(
        gamma=1.0 + 0.05 * jax.random.normal(k1, (c,), jnp.float32),
        beta=0.05 * jax.random.normal(k2, (c,), jnp.float32),
        mean=0.05 * jax.random.normal(k3, (c,), jnp.float32),
        var=1.0 + 0.05 * jax.random.uniform(k4, (c,), jnp.float32),
    )


def xavier_uniform(key, shape):
    rf = shape[2] * shape[3]
    fan_in, fan_out = shape[1] * rf, shape[0] * rf
    bound = float(np.sqrt(6.0 / (fan_in + fan_out)))
    return jax.random.uniform(key, shape, jnp.float32, -bound, bound)


def make_params(key):
    keys = iter(jax.random.split(key, 256))
    p = {}
    p["conv1"] = init_conv(next(keys), 64, 3, 7, 7)
    p["bn1"] = init_bn(next(keys), 64)
    in_ch = 64
    layers = []
    for out_ch, stride in LAYER_CFG:
        blocks = []
        for b in range(2):
            s = stride if b == 0 else 1
            blk = dict(
                conv1=init_conv(next(keys), out_ch, in_ch if b == 0 else out_ch, 3, 3),
                bn1=init_bn(next(keys), out_ch),
                conv2=init_conv(next(keys), out_ch, out_ch, 3, 3),
                bn2=init_bn(next(keys), out_ch),
            )
            if b == 0 and (s != 1 or in_ch != out_ch):
                blk["ds_conv"] = init_conv(next(keys), out_ch, in_ch, 1, 1)
                blk["ds_bn"] = init_bn(next(keys), out_ch)
            blocks.append(blk)
        layers.append(blocks)
        in_ch = out_ch
    p["layers"] = layers
    p["deconv"] = [xavier_uniform(next(keys), (ci, co, 4, 4)) for ci, co in DECONV_CHS]
    p["conv6_w"] = xavier_uniform(next(keys), (9, 16, 1, 1))
    p["conv6_b"] = (1.0 / np.sqrt(16.0)) * jax.random.uniform(
        next(keys), (9,), jnp.float32, -1.0, 1.0)
    return p


# ----------------------------------------------------------------------------
# Forward pass (matches BaselineNet.forward), NHWC + bf16 internally
# ----------------------------------------------------------------------------
def basic_block(x, blk, stride):
    out1 = conv_packed(x, blk["conv1"], 3, 3, stride, 1, relu=True)
    if "ds" in blk:
        identity = conv_packed(x, blk["ds"], 1, 1, stride, 0, relu=False)
    else:
        identity = x
    # residual add + ReLU fused into the conv2 matmul epilogue
    return conv_packed(out1, blk["conv2"], 3, 3, 1, 1, relu=True,
                       residual=identity)


def baseline_net_forward(packed, imgs):
    x = jnp.transpose(imgs, (0, 2, 3, 1)).astype(jnp.bfloat16)   # NCHW -> NHWC once
    # backbone = resnet18 children()[:-2]
    x = conv_packed(x, packed["conv1"], 7, 7, 2, 3, relu=True)
    x = maxpool_nhwc(x, k=3, stride=2, pad=1)
    for blocks, (_, stride) in zip(packed["layers"], LAYER_CFG):
        for b, blk in enumerate(blocks):
            x = basic_block(x, blk, stride if b == 0 else 1)
    # deconv head: 4x (ConvTranspose2d k4 s2 p1 + ReLU), then deconv5+ReLU with
    # the 1x1 conv6 (bias, no activation) fused into its epilogue.
    for pw in packed["deconv"][:-1]:
        x = conv_transpose_k4s2p1(x, pw, relu=True)
    head = packed["head"]
    x = conv_transpose_k4s2p1(x, packed["deconv"][-1], relu=True,
                              w6=head["w6"], b6=head["b6"],
                              out_dtype=jnp.float32)
    return jnp.transpose(x, (0, 3, 1, 2))                        # NHWC -> NCHW once


# ----------------------------------------------------------------------------
# Numerical self-check of the 4-phase ConvTranspose decomposition (tiny, f32
# reference built straight from the PyTorch definition; bf16 tolerance).
# ----------------------------------------------------------------------------
def _check_deconv_decomposition():
    rng = np.random.RandomState(0)
    cin, cout, h, w = 2, 3, 3, 3
    x = rng.randn(1, h, w, cin).astype(np.float32)
    wt = rng.randn(cin, cout, 4, 4).astype(np.float32)
    ref = np.zeros((1, 2 * h, 2 * w, cout), np.float32)
    for iy in range(h):
        for ix in range(w):
            for ky in range(4):
                for kx in range(4):
                    oy, ox = 2 * iy + ky - 1, 2 * ix + kx - 1
                    if 0 <= oy < 2 * h and 0 <= ox < 2 * w:
                        ref[0, oy, ox, :] += x[0, iy, ix, :] @ wt[:, :, ky, kx]
    pw = _pack_B(_deconv_weight_matrix(jnp.asarray(wt)),
                 jnp.zeros((4 * cout,), jnp.float32))
    got = np.asarray(conv_transpose_k4s2p1(jnp.asarray(x), pw, relu=False)
                     ).astype(np.float32)
    np.testing.assert_allclose(got, ref, rtol=0.05, atol=0.1)


if __name__ == "__main__":
    _check_deconv_decomposition()

    key = jax.random.PRNGKey(0)
    kp, kx = jax.random.split(key)
    raw_params = make_params(kp)
    packed = pack_params(raw_params)        # one-time weight packing (pre-jit)

    # small input consistent with the module: NCHW, 3 channels, 64x64 spatial
    imgs = jax.random.normal(kx, (2, 3, 64, 64), jnp.float32)

    fwd = jax.jit(baseline_net_forward)
    out = jax.block_until_ready(fwd(packed, imgs))

    assert out.shape == (2, 9, 64, 64), out.shape
    assert out.dtype == jnp.float32
    assert bool(jnp.all(jnp.isfinite(out)))
    print("KERNEL_OK")
</pallas_src>

<mosaic_0001>
module attributes {stable_mosaic.version = 11 : i64} {
  func.func @_mm_kernel(%arg0: i32, %arg1: i32, %arg2: memref<32x8xbf16, #tpu.memory_space<vmem>>, %arg3: memref<8x12xbf16, #tpu.memory_space<vmem>>, %arg4: memref<1x12xf32, #tpu.memory_space<vmem>>, %arg5: memref<32x12xbf16, #tpu.memory_space<vmem>>) attributes {dimension_semantics = [#tpu.dimension_semantics<parallel>, #tpu.dimension_semantics<parallel>], iteration_bounds = array<i64: 1, 1>, scalar_prefetch = 0 : i64, scratch_operands = 0 : i64, tpu.core_type = #tpu.core_type<tc>, window_params = [{transform_indices = @transform_0, window_bounds = array<i64: 32, 8>}, {transform_indices = @transform_1, window_bounds = array<i64: 8, 12>}, {transform_indices = @transform_2, window_bounds = array<i64: 1, 12>}, {transform_indices = @transform_3, window_bounds = array<i64: 32, 12>}]} {
    %c0 = arith.constant 0 : index
    %c0_0 = arith.constant 0 : index
    %0 = vector.load %arg3[%c0, %c0_0] : memref<8x12xbf16, #tpu.memory_space<vmem>>, vector<8x12xbf16>
    %c0_1 = arith.constant 0 : index
    %c0_2 = arith.constant 0 : index
    %1 = vector.load %arg2[%c0_1, %c0_2] : memref<32x8xbf16, #tpu.memory_space<vmem>>, vector<32x8xbf16>
    %cst = arith.constant dense<0.000000e+00> : vector<32x12xf32>
    %2 = tpu.matmul %1, %0, %cst {dimension_numbers = #tpu.dot_dimension_numbers<[1], [0], [0], [1], [0, 0, 1, 1], [], []>} : vector<32x8xbf16>, vector<8x12xbf16>, vector<32x12xf32> -> vector<32x12xf32>
    %c0_3 = arith.constant 0 : index
    %c0_4 = arith.constant 0 : index
    %3 = vector.load %arg4[%c0_3, %c0_4] : memref<1x12xf32, #tpu.memory_space<vmem>>, vector<1x12xf32>
    %4 = vector.broadcast %3 : vector<1x12xf32> to vector<32x12xf32>
    %5 = arith.addf %2, %4 : vector<32x12xf32>
    %6 = arith.truncf %5 : vector<32x12xf32> to vector<32x12xbf16>
    %c0_5 = arith.constant 0 : index
    %c0_6 = arith.constant 0 : index
    %7 = vector.load %arg5[%c0_5, %c0_6] : memref<32x12xbf16, #tpu.memory_space<vmem>>, vector<32x12xbf16>
    tpu.vector_store %arg5[%c0_5, %c0_6], %6 {strides = array<i32>} : memref<32x12xbf16, #tpu.memory_space<vmem>>, vector<32x12xbf16>,
    return
  }
  func.func @transform_0(%arg0: i32, %arg1: i32) -> (i32, i32) {
    %c0_i32 = arith.constant 0 : i32
    %c0_i32_0 = arith.constant 0 : i32
    return %arg0, %c0_i32 : i32, i32
  }
  func.func @transform_1(%arg0: i32, %arg1: i32) -> (i32, i32) {
    %c0_i32 = arith.constant 0 : i32
    %c0_i32_0 = arith.constant 0 : i32
    return %c0_i32, %arg1 : i32, i32
  }
  func.func @transform_2(%arg0: i32, %arg1: i32) -> (i32, i32) {
    %c0_i32 = arith.constant 0 : i32
    %c0_i32_0 = arith.constant 0 : i32
    return %c0_i32, %arg1 : i32, i32
  }
  func.func @transform_3(%arg0: i32, %arg1: i32) -> (i32, i32) {
    %c0_i32 = arith.constant 0 : i32
    return %arg0, %arg1 : i32, i32
  }
}

</mosaic_0001>

<bundles_post_ra>
// kernel: tpu_custom_call.1
= control target key start
LH: loop header
LB: loop body
LE: loop exit
PB: predicated region body
PF: predicated region fallthrough
CT: control target
= control target key end

     0   :  { %vm41_vm0 = vcmask 1043456   ;;  %vm34_vm1 = vcmask 64512   ;;  %vm68_vm2 = vcmask 93184   ;;  %s135_s1 = inlined_call_operand.vmem [shape: bf16[8,12], index: 1, kind: input, shape index: {}]   ;;  %s136_s0 = inlined_call_operand.vmem [shape: bf16[32,8], index: 0, kind: input, shape index: {}]   ;;  %s137_s2 = inlined_call_operand.vmem [shape: f32[1,12], index: 2, kind: input, shape index: {}]   ;;  %s138_s3 = inlined_call_operand.vmem [shape: bf16[32,12], index: 3, kind: output, shape index: {}]  }
   0x1   :  { %v15_v0 = vld [vmem:[%s135_s1] sm:$0xf]  ;;  %v88_v3 = vld [vmem:[%s136_s0 + $0x8] sm:$0xff] }
   0x2   :  { %v43_v1 = vsel %vm41_vm0, %v15_v0, 0  ;;  %v87_v2 = vld [vmem:[%s136_s0] sm:$0xff] }
   0x3   :  { %52 = vmatpush.bf16.msra.mxu0 %v43_v1  ;;  %89 = vmatpush.bf16.msra.mxu1 %v43_v1  ;;  %v90_v4 = vld [vmem:[%s137_s2] ss:$0 sm:$0xff] }
   0x6   :  { %85 = vmatmul.msk.bf16.vlgmr.msra.gmra.mxu0 %vm34_vm1, %v87_v2  ;;  %86 = vmatmul.msk.bf16.vlgmr.msra.gmra.mxu1 %vm34_vm1, %v88_v3 }
  0x83   :  { %v54_v5 = vpop.f32.mrf.mxu0  ;;  %v59_v6 = vpop.f32.mrf.mxu1 }
  0x84   :  { %v55_v7 = vadd.f32 %v90_v4, %v54_v5  ;;  %v60_v8 = vadd.f32 %v90_v4, %v59_v6 }
  0x86   :  { %v64_v9 = vpack.c.bf16 %v55_v7, %v55_v7  ;;  %v66_v10 = vpack.c.bf16 %v60_v8, %v60_v8 }
  0x88   :  { %69 = vst.msk [vmem:[%s138_s3] sm:$0xf] %vm68_vm2, %v64_v9 }
  0x89   :  { %71 = vst.msk [vmem:[%s138_s3 + $0x8] sm:$0xf] %vm68_vm2, %v66_v10 }
  0x8b   :  { %v56_v11 = vpop.f32.mrf.mxu0  ;;  %v61_v12 = vpop.f32.mrf.mxu1 }
  0x8c   :  { %v57_v13 = vadd.f32 %v90_v4, %v56_v11  ;;  %v62_v14 = vadd.f32 %v90_v4, %v61_v12 }
  0x8e   :  { %v65_v15 = vpack.c.bf16 %v57_v13, %v57_v13  ;;  %v67_v16 = vpack.c.bf16 %v62_v14, %v62_v14 }
  0x90   :  { %70 = vst.msk [vmem:[%s138_s3 + $0x4] sm:$0xf] %vm68_vm2, %v65_v15 }
  0x91   :  { %72 = vst.msk [vmem:[%s138_s3 + $0xc] sm:$0xf] %vm68_vm2, %v67_v16 }

</bundles_post_ra>
